<compile_context>
chip_gen: v7x
topology: tpu7x:2x2x1
jax: 0.10.0
libtpu: 0.0.40
codegen_flags: <defaults>
</compile_context>

<pallas_src>
import functools

import jax
import jax.numpy as jnp
from jax.experimental import pallas as pl
from jax.experimental.pallas import tpu as pltpu


def _round_up(x, m):
    return (x + m - 1) // m * m


# -----------------------------------------------------------------------------
# Kernel: one grid step = one graph pair.
#   x_ref : (2N, 2F)    block-diag node features
#   a_ref : (2N, 2N)    block-diag normalized adjacency
#   p_ref : (R, Ws)     packed parameter slab
#   o_ref : (1, C_pad)  lane-dense padded sigmoid(logits)
# -----------------------------------------------------------------------------
def dual_gnn_kernel(x_ref, a_ref, p_ref, o_ref, *,
                    n_nodes, hidden_dim, c_pad,
                    off_brows, off_w1, off_b1, off_w2, off_b2):
    N, H = n_nodes, hidden_dim
    N2, H2 = 2 * N, 2 * H
    F2 = x_ref.shape[1]

    w_gcn = p_ref[0:F2, 0:H]                         # [w_mol ; w_int]  (2F, H)
    b_rows = p_ref[off_brows:off_brows + N2, 0:H]    # per-row GCN bias (2N, H)
    w1_mol = p_ref[off_w1:off_w1 + H, 0:H]
    w1_int = p_ref[off_w1 + H:off_w1 + H2, 0:H]
    b1 = p_ref[off_b1:off_b1 + 1, 0:H]
    w2 = p_ref[off_w2:off_w2 + H, 0:c_pad]
    b2 = p_ref[off_b2:off_b2 + 1, 0:c_pad]

    # Both branches' X @ W in a single MXU pass (K = 2F = 128 lanes).
    xw = jnp.dot(x_ref[...], w_gcn, preferred_element_type=jnp.float32)       # (2N, H)
    # Both branches' propagation in a single MXU pass (block-diagonal A).
    h = jnp.dot(a_ref[...], xw, preferred_element_type=jnp.float32) + b_rows  # (2N, H)
    h = jnp.maximum(h, 0.0)                           # ReLU; dropout == identity (eval)

    # Per-branch mean pooling over the true node count.
    m_mol = jnp.mean(h[0:N, :], axis=0, keepdims=True)     # (1, H)
    m_int = jnp.mean(h[N:N2, :], axis=0, keepdims=True)    # (1, H)

    # fc1(concat([m_mol, m_int])) == m_mol @ W1[:H] + m_int @ W1[H:]
    z1 = (jnp.dot(m_mol, w1_mol, preferred_element_type=jnp.float32)
          + jnp.dot(m_int, w1_int, preferred_element_type=jnp.float32) + b1)
    z1 = jnp.maximum(z1, 0.0)                         # ReLU; dropout == identity (eval)

    logits = jnp.dot(z1, w2, preferred_element_type=jnp.float32) + b2         # (1, C_pad)
    o_ref[...] = jax.nn.sigmoid(logits)


# -----------------------------------------------------------------------------
# Host-side helpers.
# -----------------------------------------------------------------------------
def gcn_norm_adj(edge_index, num_nodes):
    """Dense GCN normalization D^{-1/2}(A + I_missing)D^{-1/2}.

    Self loops are only added to nodes that do not already have one
    (matches PyG's add_remaining_self_loops). Structure-only: precompute once
    per graph and reuse across forward calls.
    """
    src, dst = edge_index[0], edge_index[1]
    a = jnp.zeros((num_nodes, num_nodes), jnp.float32).at[dst, src].add(1.0)
    missing = (jnp.diagonal(a) == 0.0).astype(jnp.float32)
    a = a + jnp.diag(missing)
    deg = jnp.sum(a, axis=1)
    dinv = jnp.where(deg > 0.0, jax.lax.rsqrt(deg), 0.0)
    return dinv[:, None] * a * dinv[None, :]


def _pack_params(params, num_nodes):
    """Pack all weights/biases into one [R, Ws] f32 slab (a single DMA)."""
    F, H = params["w_mol"].shape
    C = params["w2"].shape[1]
    N = num_nodes
    F2, N2, H2 = 2 * F, 2 * N, 2 * H
    c_pad = _round_up(C, 128)
    ws = max(_round_up(H, 128), c_pad)

    off_wg = 0
    off_brows = _round_up(off_wg + F2, 8)
    off_w1 = _round_up(off_brows + N2, 8)
    off_b1 = _round_up(off_w1 + H2, 8)
    off_w2 = _round_up(off_b1 + 1, 8)
    off_b2 = _round_up(off_w2 + H, 8)
    rows = _round_up(off_b2 + 1, 8)

    slab = jnp.zeros((rows, ws), jnp.float32)
    slab = slab.at[off_wg:off_wg + F2, :H].set(
        jnp.concatenate([params["w_mol"], params["w_int"]], axis=0))
    b_rows = jnp.concatenate(
        [jnp.broadcast_to(params["b_mol"], (N, H)),
         jnp.broadcast_to(params["b_int"], (N, H))], axis=0)
    slab = slab.at[off_brows:off_brows + N2, :H].set(b_rows)
    slab = slab.at[off_w1:off_w1 + H2, :H].set(params["w1"])
    slab = slab.at[off_b1, :H].set(params["b1"])
    slab = slab.at[off_w2:off_w2 + H, :C].set(params["w2"])
    slab = slab.at[off_b2, :C].set(params["b2"])

    offsets = dict(off_brows=off_brows, off_w1=off_w1, off_b1=off_b1,
                   off_w2=off_w2, off_b2=off_b2)
    return slab, offsets, c_pad


@jax.jit
def dual_gnn_forward_batched(params, x_mol, a_mol, x_int, a_int):
    """Batched forward: x_* (B, N, F), a_* (B, N, N) -> (B, num_classes)."""
    B, N, F = x_mol.shape
    H = params["w1"].shape[1]
    C = params["w2"].shape[1]
    N2, F2 = 2 * N, 2 * F

    # Block-diagonal packing: 2 per-graph slabs instead of 4 operands.
    x_bd = jnp.zeros((B, N2, F2), jnp.float32)
    x_bd = x_bd.at[:, :N, :F].set(x_mol)
    x_bd = x_bd.at[:, N:, F:].set(x_int)
    a_bd = jnp.zeros((B, N2, N2), jnp.float32)
    a_bd = a_bd.at[:, :N, :N].set(a_mol)
    a_bd = a_bd.at[:, N:, N:].set(a_int)

    slab, offs, c_pad = _pack_params(params, N)
    rows, ws = slab.shape

    kernel = functools.partial(dual_gnn_kernel, n_nodes=N, hidden_dim=H,
                               c_pad=c_pad, **offs)
    out = pl.pallas_call(
        kernel,
        out_shape=jax.ShapeDtypeStruct((B, 1, c_pad), jnp.float32),
        grid=(B,),
        in_specs=[
            pl.BlockSpec((None, N2, F2), lambda g: (g, 0, 0)),
            pl.BlockSpec((None, N2, N2), lambda g: (g, 0, 0)),
            pl.BlockSpec((rows, ws), lambda g: (0, 0)),   # constant block: DMA'd once
        ],
        out_specs=pl.BlockSpec((None, 1, c_pad), lambda g: (g, 0, 0)),
        compiler_params=pltpu.CompilerParams(
            dimension_semantics=("parallel",)),
    )(x_bd, a_bd, slab)
    return out[:, 0, :C]


def dual_gnn_forward(params, x_molecular, edge_index_molecular,
                     x_interaction, edge_index_interaction):
    """Single graph-pair forward matching the PyTorch module's signature."""
    n = x_molecular.shape[0]
    a_mol = gcn_norm_adj(edge_index_molecular, n)
    a_int = gcn_norm_adj(edge_index_interaction, n)
    out = dual_gnn_forward_batched(params, x_molecular[None], a_mol[None],
                                   x_interaction[None], a_int[None])
    return out[0]


# -----------------------------------------------------------------------------
# Pure-JAX reference (for correctness check) + deterministic init + demo.
# -----------------------------------------------------------------------------
def _reference_forward(params, x_mol, a_mol, x_int, a_int):
    def gcn(a, x, w, b):
        return jnp.maximum(a @ (x @ w) + b, 0.0)
    m_mol = jnp.mean(gcn(a_mol, x_mol, params["w_mol"], params["b_mol"]), axis=0)
    m_int = jnp.mean(gcn(a_int, x_int, params["w_int"], params["b_int"]), axis=0)
    m = jnp.concatenate([m_mol, m_int], axis=-1)
    z1 = jnp.maximum(m @ params["w1"] + params["b1"], 0.0)
    return jax.nn.sigmoid(z1 @ params["w2"] + params["b2"])


def init_params(key, num_features, hidden_dim, num_classes):
    ks = jax.random.split(key, 8)
    scale_g = 1.0 / jnp.sqrt(num_features)
    scale_1 = 1.0 / jnp.sqrt(2 * hidden_dim)
    scale_2 = 1.0 / jnp.sqrt(hidden_dim)
    return {
        "w_mol": jax.random.normal(ks[0], (num_features, hidden_dim), jnp.float32) * scale_g,
        "b_mol": jax.random.normal(ks[1], (hidden_dim,), jnp.float32) * 0.01,
        "w_int": jax.random.normal(ks[2], (num_features, hidden_dim), jnp.float32) * scale_g,
        "b_int": jax.random.normal(ks[3], (hidden_dim,), jnp.float32) * 0.01,
        "w1": jax.random.normal(ks[4], (2 * hidden_dim, hidden_dim), jnp.float32) * scale_1,
        "b1": jax.random.normal(ks[5], (hidden_dim,), jnp.float32) * 0.01,
        "w2": jax.random.normal(ks[6], (hidden_dim, num_classes), jnp.float32) * scale_2,
        "b2": jax.random.normal(ks[7], (num_classes,), jnp.float32) * 0.01,
    }


if __name__ == "__main__":
    num_nodes = 10
    num_features = 64
    hidden_dim = 32
    num_classes = 1
    batch = 4

    key = jax.random.PRNGKey(0)
    k_xm, k_xi, k_params = jax.random.split(key, 3)
    x_mol = jax.random.normal(k_xm, (batch, num_nodes, num_features), jnp.float32)
    x_int = jax.random.normal(k_xi, (batch, num_nodes, num_features), jnp.float32)

    edge_index_molecular = jnp.array([[0, 1, 1, 2], [1, 0, 2, 1]], dtype=jnp.int32)
    edge_index_interaction = jnp.array([[0, 1], [1, 0]], dtype=jnp.int32)

    # A_hat depends only on graph structure: build once, reuse for every call.
    a_mol = jnp.broadcast_to(gcn_norm_adj(edge_index_molecular, num_nodes),
                             (batch, num_nodes, num_nodes))
    a_int = jnp.broadcast_to(gcn_norm_adj(edge_index_interaction, num_nodes),
                             (batch, num_nodes, num_nodes))

    params = init_params(k_params, num_features, hidden_dim, num_classes)

    out = dual_gnn_forward_batched(params, x_mol, a_mol, x_int, a_int)
    out = jax.block_until_ready(out)

    ref = jax.vmap(_reference_forward, in_axes=(None, 0, 0, 0, 0))(
        params, x_mol, a_mol, x_int, a_int)
    assert out.shape == (batch, num_classes)
    assert bool(jnp.all((out >= 0.0) & (out <= 1.0)))
    assert bool(jnp.allclose(out, ref, atol=1e-5, rtol=1e-4))

    # Single graph-pair path (same signature as the PyTorch module's forward).
    single = dual_gnn_forward(params, x_mol[0], edge_index_molecular,
                              x_int[0], edge_index_interaction)
    single = jax.block_until_ready(single)
    assert single.shape == (num_classes,)
    assert bool(jnp.allclose(single, ref[0], atol=1e-5, rtol=1e-4))

    print("KERNEL_OK")
</pallas_src>

<mosaic_0001>
module attributes {stable_mosaic.version = 11 : i64} {
  func.func @dual_gnn_kernel(%arg0: i32, %arg1: memref<1x20x128xf32, #tpu.memory_space<vmem>>, %arg2: memref<1x20x20xf32, #tpu.memory_space<vmem>>, %arg3: memref<264x128xf32, #tpu.memory_space<vmem>>, %arg4: memref<1x1x128xf32, #tpu.memory_space<vmem>>) attributes {dimension_semantics = [#tpu.dimension_semantics<parallel>], iteration_bounds = array<i64: 4>, scalar_prefetch = 0 : i64, scratch_operands = 0 : i64, tpu.core_type = #tpu.core_type<tc>, window_params = [{transform_indices = @transform_0, window_bounds = array<i64: 1, 20, 128>}, {transform_indices = @transform_1, window_bounds = array<i64: 1, 20, 20>}, {pipeline_mode = #tpu.pipeline_mode<synchronous>, transform_indices = @transform_2, window_bounds = array<i64: 264, 128>}, {transform_indices = @transform_3, window_bounds = array<i64: 1, 1, 128>}]} {
    %c0 = arith.constant 0 : index
    %c0_0 = arith.constant 0 : index
    %0 = vector.load %arg3[%c0, %c0_0] : memref<264x128xf32, #tpu.memory_space<vmem>>, vector<128x32xf32>
    %c128 = arith.constant 128 : index
    %c0_1 = arith.constant 0 : index
    %1 = vector.load %arg3[%c128, %c0_1] : memref<264x128xf32, #tpu.memory_space<vmem>>, vector<20x32xf32>
    %c152 = arith.constant 152 : index
    %c0_2 = arith.constant 0 : index
    %2 = vector.load %arg3[%c152, %c0_2] : memref<264x128xf32, #tpu.memory_space<vmem>>, vector<32x32xf32>
    %c184 = arith.constant 184 : index
    %c0_3 = arith.constant 0 : index
    %3 = vector.load %arg3[%c184, %c0_3] : memref<264x128xf32, #tpu.memory_space<vmem>>, vector<32x32xf32>
    %c216 = arith.constant 216 : index
    %c0_4 = arith.constant 0 : index
    %4 = vector.load %arg3[%c216, %c0_4] : memref<264x128xf32, #tpu.memory_space<vmem>>, vector<1x32xf32>
    %c224 = arith.constant 224 : index
    %c0_5 = arith.constant 0 : index
    %5 = vector.load %arg3[%c224, %c0_5] : memref<264x128xf32, #tpu.memory_space<vmem>>, vector<32x128xf32>
    %c256 = arith.constant 256 : index
    %c0_6 = arith.constant 0 : index
    %6 = vector.load %arg3[%c256, %c0_6] : memref<264x128xf32, #tpu.memory_space<vmem>>, vector<1x128xf32>
    %c0_7 = arith.constant 0 : index
    %c0_8 = arith.constant 0 : index
    %c0_9 = arith.constant 0 : index
    %7 = vector.load %arg1[%c0_7, %c0_8, %c0_9] : memref<1x20x128xf32, #tpu.memory_space<vmem>>, vector<1x20x128xf32>
    %8 = vector.shape_cast %7 : vector<1x20x128xf32> to vector<20x128xf32>
    %cst = arith.constant dense<0.000000e+00> : vector<20x32xf32>
    %9 = tpu.matmul %8, %0, %cst {dimension_numbers = #tpu.dot_dimension_numbers<[1], [0], [0], [1], [0, 0, 1, 1], [], []>} : vector<20x128xf32>, vector<128x32xf32>, vector<20x32xf32> -> vector<20x32xf32>
    %c0_10 = arith.constant 0 : index
    %c0_11 = arith.constant 0 : index
    %c0_12 = arith.constant 0 : index
    %10 = vector.load %arg2[%c0_10, %c0_11, %c0_12] : memref<1x20x20xf32, #tpu.memory_space<vmem>>, vector<1x20x20xf32>
    %11 = vector.shape_cast %10 : vector<1x20x20xf32> to vector<20x20xf32>
    %cst_13 = arith.constant dense<0.000000e+00> : vector<20x32xf32>
    %12 = tpu.matmul %11, %9, %cst_13 {dimension_numbers = #tpu.dot_dimension_numbers<[1], [0], [0], [1], [0, 0, 1, 1], [], []>} : vector<20x20xf32>, vector<20x32xf32>, vector<20x32xf32> -> vector<20x32xf32>
    %13 = arith.addf %12, %1 : vector<20x32xf32>
    %cst_14 = arith.constant 0.000000e+00 : f32
    %14 = vector.broadcast %cst_14 : f32 to vector<20x32xf32>
    %15 = arith.maximumf %13, %14 : vector<20x32xf32>
    %16 = vector.extract_strided_slice %15 {offsets = [0, 0], sizes = [10, 32], strides = [1, 1]} : vector<20x32xf32> to vector<10x32xf32>
    %cst_15 = arith.constant dense<0.000000e+00> : vector<32xf32>
    %17 = vector.multi_reduction <add>, %16, %cst_15 [0] : vector<10x32xf32> to vector<32xf32>
    %18 = vector.shape_cast %17 : vector<32xf32> to vector<1x32xf32>
    %cst_16 = arith.constant 1.000000e+01 : f32
    %19 = vector.broadcast %cst_16 : f32 to vector<1x32xf32>
    %20 = arith.divf %18, %19 : vector<1x32xf32>
    %21 = vector.extract_strided_slice %15 {offsets = [10, 0], sizes = [10, 32], strides = [1, 1]} : vector<20x32xf32> to vector<10x32xf32>
    %cst_17 = arith.constant dense<0.000000e+00> : vector<32xf32>
    %22 = vector.multi_reduction <add>, %21, %cst_17 [0] : vector<10x32xf32> to vector<32xf32>
    %23 = vector.shape_cast %22 : vector<32xf32> to vector<1x32xf32>
    %cst_18 = arith.constant 1.000000e+01 : f32
    %24 = vector.broadcast %cst_18 : f32 to vector<1x32xf32>
    %25 = arith.divf %23, %24 : vector<1x32xf32>
    %cst_19 = arith.constant dense<0.000000e+00> : vector<1x32xf32>
    %26 = tpu.matmul %20, %2, %cst_19 {dimension_numbers = #tpu.dot_dimension_numbers<[1], [0], [0], [1], [0, 0, 1, 1], [], []>} : vector<1x32xf32>, vector<32x32xf32>, vector<1x32xf32> -> vector<1x32xf32>
    %cst_20 = arith.constant dense<0.000000e+00> : vector<1x32xf32>
    %27 = tpu.matmul %25, %3, %cst_20 {dimension_numbers = #tpu.dot_dimension_numbers<[1], [0], [0], [1], [0, 0, 1, 1], [], []>} : vector<1x32xf32>, vector<32x32xf32>, vector<1x32xf32> -> vector<1x32xf32>
    %28 = arith.addf %26, %27 : vector<1x32xf32>
    %29 = arith.addf %28, %4 : vector<1x32xf32>
    %cst_21 = arith.constant 0.000000e+00 : f32
    %30 = vector.broadcast %cst_21 : f32 to vector<1x32xf32>
    %31 = arith.maximumf %29, %30 : vector<1x32xf32>
    %cst_22 = arith.constant dense<0.000000e+00> : vector<1x128xf32>
    %32 = tpu.matmul %31, %5, %cst_22 {dimension_numbers = #tpu.dot_dimension_numbers<[1], [0], [0], [1], [0, 0, 1, 1], [], []>} : vector<1x32xf32>, vector<32x128xf32>, vector<1x128xf32> -> vector<1x128xf32>
    %33 = arith.addf %32, %6 : vector<1x128xf32>
    %34 = arith.negf %33 : vector<1x128xf32>
    %35 = math.exp %34 : vector<1x128xf32>
    %cst_23 = arith.constant 1.000000e+00 : f32
    %36 = vector.broadcast %cst_23 : f32 to vector<1x128xf32>
    %37 = arith.addf %36, %35 : vector<1x128xf32>
    %38 = arith.divf %36, %37 : vector<1x128xf32>
    %c0_24 = arith.constant 0 : index
    %c0_25 = arith.constant 0 : index
    %c0_26 = arith.constant 0 : index
    %39 = vector.load %arg4[%c0_24, %c0_25, %c0_26] : memref<1x1x128xf32, #tpu.memory_space<vmem>>, vector<1x1x128xf32>
    %40 = vector.shape_cast %39 : vector<1x1x128xf32> to vector<1x128xf32>
    %41 = vector.shape_cast %38 : vector<1x128xf32> to vector<1x1x128xf32>
    tpu.vector_store %arg4[%c0_24, %c0_25, %c0_26], %41 {strides = array<i32>} : memref<1x1x128xf32, #tpu.memory_space<vmem>>, vector<1x1x128xf32>,
    return
  }
  func.func @transform_0(%arg0: i32) -> (i32, i32, i32) {
    %c0_i32 = arith.constant 0 : i32
    %c0_i32_0 = arith.constant 0 : i32
    %c0_i32_1 = arith.constant 0 : i32
    return %arg0, %c0_i32, %c0_i32_0 : i32, i32, i32
  }
  func.func @transform_1(%arg0: i32) -> (i32, i32, i32) {
    %c0_i32 = arith.constant 0 : i32
    %c0_i32_0 = arith.constant 0 : i32
    %c0_i32_1 = arith.constant 0 : i32
    return %arg0, %c0_i32, %c0_i32_0 : i32, i32, i32
  }
  func.func @transform_2(%arg0: i32) -> (i32, i32) {
    %c0_i32 = arith.constant 0 : i32
    %c0_i32_0 = arith.constant 0 : i32
    %c0_i32_1 = arith.constant 0 : i32
    return %c0_i32, %c0_i32_0 : i32, i32
  }
  func.func @transform_3(%arg0: i32) -> (i32, i32, i32) {
    %c0_i32 = arith.constant 0 : i32
    %c0_i32_0 = arith.constant 0 : i32
    %c0_i32_1 = arith.constant 0 : i32
    return %arg0, %c0_i32, %c0_i32_0 : i32, i32, i32
  }
}

</mosaic_0001>

<bundles_post_ra>
// kernel: dual_gnn_forward_batched.1
= control target key start
LH: loop header
LB: loop body
LE: loop exit
PB: predicated region body
PF: predicated region fallthrough
CT: control target
= control target key end

     0   :  { %s959_s12 = smov 0   ;;  %s1125_s0 = inlined_call_operand.vmem [shape: f32[4,20,128], index: 0, kind: input, shape index: {}]   ;;  %s1126_s1 = inlined_call_operand.vmem [shape: f32[4,20,20], index: 1, kind: input, shape index: {}]   ;;  %s1127_s2 = inlined_call_operand.vmem [shape: f32[264,128], index: 2, kind: input, shape index: {}]   ;;  %s1128_s3 = inlined_call_operand.vmem [shape: f32[4,1,128], index: 3, kind: output, shape index: {}]  }
   0x1 LB: > { %s721_s13 = sadd.s32 4294967295, %s934_s12   ;;  %p725_p0 = scmp.ge.s32.totalorder %s934_s12, 1  ;;  %s934_s12 = sphi %s959_s12, %s13_s12  }
   0x2   : > { %p147_p1 = scmp.lt.s32.totalorder %s934_s12, 5 }
   0x4   : > { %p148_p2 = pnand %p725_p0, %p147_p1 }
   0x5   : > { %v187_v0 = vld [vmem:[%s1127_s2] sm:$0xff] (!%p148_p2)  ;;  %v188_v1 = vld [vmem:[%s1127_s2 + $0x8] sm:$0xff] (!%p148_p2)  ;;  %v189_v2 = vld [vmem:[%s1127_s2 + $0x10] sm:$0xff] (!%p148_p2)  ;;  %v936_v3 = vmov (!%p148_p2), 0.0|0.0   ;;  %vm937_vm0 = vmmov (!%p148_p2), 0   ;;  %v938_v6 = vmov (!%p148_p2), 0.0  }
   0x6   : > { %151 = sbr.rel (%p148_p2) target bundleno = 973 (0x3cd), region = 32  ;;  %867 = vmatprep.subr.bf16.mxu0 (!%p148_p2), %v936_v3  ;;  %v868_v4 = vpack.c.bf16 (!%p148_p2), %v188_v1, %v187_v0  ;;  %v190_v5 = vld [vmem:[%s1127_s2 + $0x18] sm:$0xff] (!%p148_p2)  ;;  %810 = vmatprep.mubr.msk.f32.mxu0 (!%p148_p2), %vm937_vm0, %v938_v6  ;;  %v191_v8 = vld [vmem:[%s1127_s2 + $0x20] sm:$0xff] (!%p148_p2)  ;;  %v192_v9 = vld [vmem:[%s1127_s2 + $0x28] sm:$0xff] (!%p148_p2)  ;;  %p174_p3 = scmp.lt.s32.totalorder (!%p148_p2), %s721_s13, 3  ;;  %vm316_vm1 = vcmask (!%p148_p2), 1043456  }
   0x7   : > { %891 = vmatprep.subr.bf16.mxu1 (!%p148_p2), %v936_v3  ;;  %825 = vmatprep.mubr.msk.f32.mxu1 (!%p148_p2), %vm937_vm0, %v938_v6  ;;  %v871_v7 = vpack.c.bf16 (!%p148_p2), %v190_v5, %v189_v2  ;;  %v874_v10 = vpack.c.bf16 (!%p148_p2), %v192_v9, %v191_v8  ;;  %v193_v11 = vld [vmem:[%s1127_s2 + $0x30] sm:$0xff] (!%p148_p2)  ;;  %v194_v12 = vld [vmem:[%s1127_s2 + $0x38] sm:$0xff] (!%p148_p2)  ;;  %v195_v14 = vld [vmem:[%s1127_s2 + $0x40] sm:$0xff] (!%p148_p2)  ;;  %vm306_vm2 = vcmask (!%p148_p2), 162816   ;;  %vm403_vm3 = vcmask (!%p148_p2), 261120  }
   0x8   : > { %869 = vmatpush3.bf16.msra.mxu0 (!%p148_p2), %v868_v4  ;;  %v877_v13 = vpack.c.bf16 (!%p148_p2), %v194_v12, %v193_v11  ;;  %v196_v15 = vld [vmem:[%s1127_s2 + $0x48] sm:$0xff] (!%p148_p2)  ;;  %v197_v17 = vld [vmem:[%s1127_s2 + $0x50] sm:$0xff] (!%p148_p2)  ;;  %v198_v18 = vld [vmem:[%s1127_s2 + $0x58] sm:$0xff] (!%p148_p2)  ;;  %vm405_vm4 = vcmask (!%p148_p2), 254976   ;;  %vm418_vm5 = vcmask (!%p148_p2), 1045504  }
   0x9   : > { %870 = vmatprep.subr.bf16.mxu0 (!%p148_p2), %v936_v3  ;;  %v880_v16 = vpack.c.bf16 (!%p148_p2), %v196_v15, %v195_v14  ;;  %v883_v19 = vpack.c.bf16 (!%p148_p2), %v198_v18, %v197_v17  ;;  %v199_v20 = vld [vmem:[%s1127_s2 + $0x60] sm:$0xff] (!%p148_p2)  ;;  %v200_v21 = vld [vmem:[%s1127_s2 + $0x68] sm:$0xff] (!%p148_p2)  ;;  %v201_v23 = vld [vmem:[%s1127_s2 + $0x70] sm:$0xff] (!%p148_p2) }
   0xa   : > { %v886_v22 = vpack.c.bf16 (!%p148_p2), %v200_v21, %v199_v20  ;;  %v202_v24 = vld [vmem:[%s1127_s2 + $0x78] sm:$0xff] (!%p148_p2)  ;;  %v211_v40 = vld [vmem:[%s1127_s2 + $0xc0] sm:$0xff] (!%p148_p2)  ;;  %v212_v42 = vld [vmem:[%s1127_s2 + $0xc8] sm:$0xff] (!%p148_p2) }
   0xb   : > { %v889_v25 = vpack.c.bf16 (!%p148_p2), %v202_v24, %v201_v23  ;;  %v210_v39 = vld [vmem:[%s1127_s2 + $0xb8] sm:$0xff] (!%p148_p2)  ;;  %v213_v43 = vld [vmem:[%s1127_s2 + $0xd0] sm:$0xff] (!%p148_p2)  ;;  %v203_v45 = vld [vmem:[%s1127_s2 + $0x80] sm:$0xff] (!%p148_p2) }
   0xc   : > { %872 = vmatpush3.bf16.msra.mxu0 (!%p148_p2), %v871_v7  ;;  %v895_v41 = vpack.c.bf16 (!%p148_p2), %v211_v40, %v210_v39  ;;  %v898_v44 = vpack.c.bf16 (!%p148_p2), %v213_v43, %v212_v42  ;;  %v204_v49 = vld [vmem:[%s1127_s2 + $0x88] sm:$0xff] (!%p148_p2)  ;;  %v205_v54 = vld [vmem:[%s1127_s2 + $0x90] sm:$0xf] (!%p148_p2)  ;;  %v207_v17 = vld [vmem:[%s1127_s2 + $0xa0] sm:$0xff] (!%p148_p2) }
   0xd   : > { %873 = vmatprep.subr.bf16.mxu0 %v936_v3  ;;  %s1130_s13 = smov (!%p174_p3, %s721_s13), 3  ;;  %v209_v23 = vld [vmem:[%s1127_s2 + $0xb0] sm:$0xff]  ;;  %v219_v39 = vld [vmem:[%s1127_s2 + $0x100] sm:$0x1] }
   0xe   : > { %s912_s21 = smul.u32 24, %s1130_s13  ;;  %s186_s14 = scalar_lea.vmem %s1128_s3, %s1130_s13 }
  0x10   : > { %875 = vmatpush3.bf16.msra.mxu0 %v874_v10  ;;  %s178_s24 = scalar_lea.vmem %s1125_s0, %s912_s21  ;;  %s183_s27 = scalar_lea.vmem %s1126_s1, %s912_s21 }
  0x11   : > { %876 = vmatprep.subr.bf16.mxu0 %v936_v3  ;;  %v220_v26 = vld [vmem:[%s178_s24] sm:$0xff]  ;;  %v221_v27 = vld [vmem:[%s178_s24 + $0x8] sm:$0xff]  ;;  %v222_v28 = vld [vmem:[%s178_s24 + $0x10] sm:$0xf] }
  0x12   : > { %v303_v36 = vld [vmem:[%s183_s27] sm:$0xff]  ;;  %v304_v37 = vld [vmem:[%s183_s27 + $0x8] sm:$0xff]  ;;  %v305_v38 = vld [vmem:[%s183_s27 + $0x10] sm:$0xf] }
  0x14   : > { %878 = vmatpush3.bf16.msra.mxu0 %v877_v13 }
  0x15   : > { %879 = vmatprep.subr.bf16.mxu0 %v936_v3 }
  0x18   : > { %881 = vmatpush3.bf16.msra.mxu0 %v880_v16  ;;  %v206_v16 = vld [vmem:[%s1127_s2 + $0x98] sm:$0xff] }
  0x19   : > { %882 = vmatprep.subr.bf16.mxu0 %v936_v3 }
  0x1c   : > { %884 = vmatpush3.bf16.msra.mxu0 %v883_v19  ;;  %v901_v19 = vpack.c.bf16 %v207_v17, %v206_v16 }
  0x1d   : > { %885 = vmatprep.subr.bf16.mxu0 %v936_v3 }
  0x20   : > { %887 = vmatpush3.bf16.msra.mxu0 %v886_v22  ;;  %v208_v22 = vld [vmem:[%s1127_s2 + $0xa8] sm:$0xff] }
  0x21   : > { %888 = vmatprep.subr.bf16.mxu0 %v936_v3  ;;  %v904_v24 = vpack.c.bf16 %v209_v23, %v208_v22 }
  0x24   : > { %890 = vmatpush3.bf16.msra.mxu0 %v889_v25 }
  0x27   : > { %811 = vmatmul.mubr.f32.vlgmr.msra.gmra.mrb[0].mxu0 %v220_v26 }
  0x28   : > { %813 = vmatprep.mubr.msk.f32.mxu0 %vm937_vm0, %v938_v6 }
  0x2b   : > { %814 = vmatmul.mubr.f32.gmra.mrb[2].mxu0 %v221_v27  ;;  %v215_v27 = vld [vmem:[%s1127_s2 + $0xe0] sm:$0xff] }
  0x2c   : > { %816 = vmatprep.mubr.msk.f32.mxu0 %vm937_vm0, %v938_v6 }
  0x2f   : > { %817 = vmatmul.mubr.f32.gmra.mrb[4].mxu0 %v222_v28  ;;  %v216_v28 = vld [vmem:[%s1127_s2 + $0xe8] sm:$0xff] }
  0xfa   : > { %v289_v29 = vpop.f32.mrb[0].mxu0 }
  0xfb   : > { %v812_v30 = vpop.f32.mrb[1].mxu0 }
  0xfc   : > { %v217_v30 = vld [vmem:[%s1127_s2 + $0xf0] sm:$0xff] }
  0xfe   : > { %v294_v31 = vpop.f32.mrb[2].mxu0 }
  0xff   : > { %v892_v32 = vpack.c.bf16 %v294_v31, %v289_v29  ;;  %v815_v33 = vpop.f32.mrb[3].mxu0  ;;  %v907_v29 = vpack.c.bf16 %v216_v28, %v215_v27 }
 0x101   : > { %893 = vmatpush3.bf16.msra.mxu1 %v892_v32 }
 0x102   : > { %v299_v34 = vpop.f32.mrb[4].mxu0  ;;  %823 = vmatprep.subr.mxu1 %v938_v6 }
 0x103   : > { %v818_v35 = vpop.f32.mrb[5].mxu0 }
 0x105   : > { %824 = vmatpush3.msk.msra.mxu1 %vm316_vm1, %v299_v34  ;;  %v214_v34 = vld [vmem:[%s1127_s2 + $0xd8] sm:$0x1] }
 0x106   : > { %826 = vmatmul.mubr.msk.f32.vlgmr.msra.gmra.mrb[0].mxu1 %vm306_vm2, %v303_v36  ;;  %894 = vmatprep.subr.bf16.mxu1 %v936_v3 }
 0x107   : > { %828 = vmatprep.mubr.msk.f32.mxu1 %vm937_vm0, %v938_v6  ;;  %896 = vmatpush3.bf16.msra.mxu1 %v895_v41 }
 0x108   : > { %897 = vmatprep.subr.bf16.mxu1 %v936_v3 }
 0x10a   : > { %829 = vmatmul.mubr.msk.f32.gmra.mrb[2].mxu1 %vm306_vm2, %v304_v37 }
 0x10b   : > { %831 = vmatprep.mubr.msk.f32.mxu1 %vm937_vm0, %v938_v6  ;;  %899 = vmatpush3.bf16.msra.mxu1 %v898_v44 }
 0x10c   : > { %900 = vmatprep.subr.bf16.mxu1 %v936_v3 }
 0x10e   : > { %832 = vmatmul.mubr.msk.f32.gmra.mrb[4].mxu1 %vm306_vm2, %v305_v38 }
 0x10f   : > { %842 = vmatprep.mubr.msk.f32.mxu1 %vm937_vm0, %v938_v6 }
 0x1d9   : > { %v386_v46 = vpop.f32.mrb[0].mxu1 }
 0x1da   : > { %v387_v47 = vadd.f32 %v386_v46, %v203_v45  ;;  %v827_v48 = vpop.f32.mrb[1].mxu1 }
 0x1dc   : > { %v400_v51 = vmax.f32 %v387_v47, 0.0 }
 0x1dd   : > { %v391_v50 = vpop.f32.mrb[2].mxu1 }
 0x1de   : > { %v392_v52 = vadd.f32 %v391_v50, %v204_v49  ;;  %v830_v53 = vpop.f32.mrb[3].mxu1  ;;  %v404_v57 = vsel %vm403_vm3, %v400_v51, 0.0 }
 0x1e0   : > { %v401_v55 = vmax.f32 %v392_v52, 0.0 }
 0x1e1   : > { %v396_v56 = vpop.f32.mrb[4].mxu1 }
 0x1e2   : > { %v406_v58 = vsel %vm405_vm4, %v401_v55, 0.0  ;;  %v397_v59 = vadd.f32 %v396_v56, %v205_v54  ;;  %v833_v60 = vpop.f32.mrb[5].mxu1  ;;  %v419_v63 = vrot.slane %v401_v55, 2 }
 0x1e3   : > { %v407_v61 = vadd.f32 %v406_v58, %v404_v57 }
 0x1e4   : > { %v402_v62 = vmax.f32 %v397_v59, 0.0 }
 0x1e5   : > { %v408_v1 = vrot.slane %v407_v61, 4 }
 0x1e6   : > { %v420_v0 = vrot.slane %v402_v62, 2 }
 0x1e7   : > { %v409_v8 = vadd.f32 %v408_v1, %v407_v61 }
 0x1e8   : > { %v421_v2 = vsel %vm418_vm5, %v419_v63, %v420_v0  ;;  %v425_v4 = vsel %vm405_vm4, %v420_v0, 0.0 }
 0x1e9   : > { %v424_v5 = vsel %vm403_vm3, %v421_v2, 0.0  ;;  %v410_v11 = vrot.slane %v409_v8, 2 }
 0x1ea   : > { %v426_v7 = vadd.f32 %v425_v4, %v424_v5 }
 0x1eb   : > { %v411_v14 = vadd.f32 %v410_v11, %v409_v8 }
 0x1ec   : > { %v427_v9 = vrot.slane %v426_v7, 4 }
 0x1ed   : > { %v412_v20 = vrot.slane %v411_v14, 1 }
 0x1ee   : > { %v428_v10 = vadd.f32 %v427_v9, %v426_v7 }
 0x1ef   : > { %v413_v25 = vadd.f32 %v412_v20, %v411_v14 }
 0x1f0   : > { %v429_v12 = vrot.slane %v428_v10, 2 }
 0x1f1   : > { %v415_v26 = vmul.f32 0.1, %v413_v25 }
 0x1f2   : > { %v430_v13 = vadd.f32 %v429_v12, %v428_v10 }
 0x1f4   : > { %v431_v15 = vrot.slane %v430_v13, 1 }
 0x1f6   : > { %v432_v18 = vadd.f32 %v431_v15, %v430_v13 }
 0x1f8   : > { %v433_v21 = vmul.f32 0.1, %v432_v18 }
 0x1fa   : > { %843 = vmatmul.mubr.msk.f32.vlgmr.msra.gmra.mrb[6].mxu1 %vm403_vm3, %v433_v21 }
 0x1fb   : > { %902 = vmatpush3.bf16.msra.mxu1 %v901_v19  ;;  %853 = vmatprep.mubr.msk.f32.mxu1 %vm937_vm0, %v938_v6 }
 0x1fc   : > { %903 = vmatprep.subr.bf16.mxu1 %v936_v3 }
 0x1ff   : > { %905 = vmatpush3.bf16.msra.mxu1 %v904_v24 }
 0x200   : > { %906 = vmatprep.subr.bf16.mxu1 %v936_v3 }
 0x202   : > { %854 = vmatmul.mubr.msk.f32.vlgmr.msra.gmra.mrb[8].mxu1 %vm403_vm3, %v415_v26 }
 0x203   : > { %864 = vmatprep.mubr.msk.f32.mxu1 %vm937_vm0, %v938_v6  ;;  %908 = vmatpush3.bf16.msra.mxu1 %v907_v29  ;;  %v218_v6 = vld [vmem:[%s1127_s2 + $0xf8] sm:$0xff] }
 0x204   : > { %909 = vmatprep.subr.bf16.mxu1 %v936_v3  ;;  %v910_v31 = vpack.c.bf16 %v218_v6, %v217_v30 }
 0x207   : > { %911 = vmatpush3.bf16.msra.mxu1 %v910_v31 }
 0x2cd   : > { %v503_v32 = vpop.f32.mrb[6].mxu1 }
 0x2ce   : > { %v844_v33 = vpop.f32.mrb[7].mxu1 }
 0x2d5   : > { %v576_v35 = vpop.f32.mrb[8].mxu1 }
 0x2d6   : > { %v577_v36 = vadd.f32 %v576_v35, %v503_v32  ;;  %v855_v3 = vpop.f32.mrb[9].mxu1 }
 0x2d8   : > { %v580_v37 = vadd.f32 %v577_v36, %v214_v34 }
 0x2da   : > { %v581_v38 = vmax.f32 %v580_v37, 0.0 }
 0x2dc   : > { %865 = vmatmul.mubr.msk.f32.vlgmr.msra.gmra.mrb[10].mxu1 %vm403_vm3, %v581_v38 }
 0x3af   : > { %v651_v40 = vpop.f32.mrb[10].mxu1 }
 0x3b0   : > { %v652_v41 = vadd.f32 %v651_v40, %v219_v39  ;;  %v866_v42 = vpop.f32.mrb[11].mxu1 }
 0x3b2   : > { %v735_v43 = vmul.f32 -1.442695, %v652_v41 }
 0x3b4   : > { %924 = vpow2.f32 %v735_v43 }
 0x3be   : > { %v925_v44 = vpop.eup %924 }
 0x3bf   : > { %v658_v45 = vadd.f32 1.0, %v925_v44 }
 0x3c1   : > { %926 = vrcp.f32 %v658_v45 }
 0x3cb   : > { %v927_v46 = vpop.eup %926 }
 0x3cc   : > { %661 = vst [vmem:[%s186_s14] sm:$0x1] %v927_v46 }
 0x3cd PF: > { %s13_s12 = sadd.s32 1, %s934_s12  }
 0x3ce   : > { %p10_p4 = scmp.ge.s32.totalorder %s13_s12, 6  }
 0x3d0   :  { %12 = sbr.rel (!%p10_p4) target bundleno = 1 (0x1), region = 65 }

</bundles_post_ra>
